<compile_context>
chip_gen: v7x
topology: tpu7x:2x2x1
jax: 0.10.0
libtpu: 0.0.40
codegen_flags: <defaults>
</compile_context>

<pallas_src>
import functools

import jax
import jax.numpy as jnp
from jax import lax
from jax.experimental import pallas as pl
from jax.experimental.pallas import tpu as pltpu


def _vector_loss_kernel(q_ref, t_diag_ref, t_ref, loss_ref, m_scr, l_scr,
                        *, score_ratio):
    """One (tq, tk) logits tile of the scaled online softmax."""
    ki = pl.program_id(1)
    nk = pl.num_programs(1)
    scale = jnp.float32(score_ratio)

    @pl.when(ki == 0)
    def _init():
        m_scr[...] = jnp.full_like(m_scr, -jnp.inf)
        l_scr[...] = jnp.zeros_like(l_scr)

    # logits tile = Q_tile @ T_tile^T, contracting the hidden dim of both
    # operands via dot_general (no explicit transpose of the T tile).
    dims = (((1,), (1,)), ((), ()))
    if q_ref.dtype == jnp.float32:
        # f32 inputs: fold score_ratio into the (tq, D) q tile
        # (O(B*D) multiplies instead of O(B*tk) on the logits tile).
        logits = lax.dot_general(q_ref[...] * scale, t_ref[...],
                                 dimension_numbers=dims,
                                 preferred_element_type=jnp.float32)
    else:
        # Low-precision (e.g. bf16) inputs: feed the MXU in the native dtype,
        # accumulate in f32, and scale the f32 logits afterwards.
        logits = lax.dot_general(q_ref[...], t_ref[...],
                                 dimension_numbers=dims,
                                 preferred_element_type=jnp.float32) * scale

    # Online (flash-style) softmax statistics for this q tile.
    m_prev = m_scr[...]
    m_new = jnp.maximum(m_prev, jnp.max(logits, axis=-1, keepdims=True))
    alpha = jnp.exp(m_prev - m_new)                     # 0 on first step (m_prev=-inf)
    p = jnp.exp(logits - m_new)
    l_scr[...] = alpha * l_scr[...] + jnp.sum(p, axis=-1, keepdims=True)
    m_scr[...] = m_new

    @pl.when(ki == nk - 1)
    def _finalize():
        # Target logit for row i is logits[i, i] = score_ratio * <q_i, t_i>,
        # computed directly from the row-aligned T block (t_diag_ref), so it
        # is independent of the k tiling and needs no (tq, tk) iota mask.
        qf = q_ref[...].astype(jnp.float32)
        tf = t_diag_ref[...].astype(jnp.float32)
        diag = scale * jnp.sum(qf * tf, axis=-1, keepdims=True)   # (tq, 1)
        lse = m_scr[...] + jnp.log(l_scr[...])                     # (tq, 1)
        loss_ref[...] = lse - diag                                 # per-example CE


def vector_loss(q_vecs: jax.Array, t_vecs: jax.Array, score_ratio: float,
                *, tq: int | None = None, tk: int | None = None) -> jax.Array:
    """Scalar cross-entropy loss matching VectorLossModel.forward."""
    B, D = q_vecs.shape
    assert t_vecs.shape == (B, D)

    # TODO(synk): at toy sizes (B=8, D=32) a standalone pallas_call is pure
    # launch/DMA overhead; in production fuse this loss into the kernel that
    # produces Q/T (or leave it to XLA).  The tiling below targets large B.
    if tq is None:
        tq = B if B <= 256 else 256
    if tk is None:
        tk = B if B <= 512 else 512
    assert B % tq == 0 and B % tk == 0, (B, tq, tk)
    n_q, n_k = B // tq, B // tk

    itemsize = jnp.dtype(q_vecs.dtype).itemsize
    cost = pl.CostEstimate(
        flops=2 * B * B * D + 3 * B * D,
        transcendentals=B * B + 2 * B * n_k,
        bytes_accessed=2 * B * D * itemsize      # Q, T streamed once
        + n_q * tq * D * itemsize                # row-aligned T block per q tile
        + B * 4,                                 # per-row loss output
    )

    per_row = pl.pallas_call(
        functools.partial(_vector_loss_kernel, score_ratio=float(score_ratio)),
        out_shape=jax.ShapeDtypeStruct((B, 1), jnp.float32),
        grid_spec=pltpu.PrefetchScalarGridSpec(
            num_scalar_prefetch=0,
            grid=(n_q, n_k),                                   # reduction axis last
            in_specs=[
                pl.BlockSpec((tq, D), lambda qi, ki: (qi, 0)),  # Q rows of this tile
                pl.BlockSpec((tq, D), lambda qi, ki: (qi, 0)),  # T rows aligned w/ Q (diag)
                pl.BlockSpec((tk, D), lambda qi, ki: (ki, 0)),  # T rows of this k tile
            ],
            out_specs=pl.BlockSpec((tq, 1), lambda qi, ki: (qi, 0)),
            scratch_shapes=[
                pltpu.VMEM((tq, 1), jnp.float32),   # running max
                pltpu.VMEM((tq, 1), jnp.float32),   # running sum-of-exp
            ],
        ),
        compiler_params=pltpu.CompilerParams(
            dimension_semantics=("parallel", "arbitrary"),
        ),
        cost_estimate=cost,
    )(q_vecs, t_vecs, t_vecs)

    # Mean reduction over per-example losses: tiny, leave to XLA.
    return jnp.mean(per_row)


def _reference_loss(q_vecs, t_vecs, score_ratio):
    qf = q_vecs.astype(jnp.float32)
    tf = t_vecs.astype(jnp.float32)
    logits = jnp.dot(qf, tf.T, precision=jax.lax.Precision.HIGHEST) * score_ratio
    logp = jax.nn.log_softmax(logits, axis=-1)
    idx = jnp.arange(logits.shape[0])
    return -jnp.mean(logp[idx, idx])


if __name__ == "__main__":
    score_ratio = 20.0

    # 1) Config implied by the module: conf.batch_size = 8, hidden = 32.
    key = jax.random.PRNGKey(0)
    kq, kt = jax.random.split(key)
    q8 = jax.random.normal(kq, (8, 32), dtype=jnp.float32)
    t8 = jax.random.normal(kt, (8, 32), dtype=jnp.float32)
    loss8 = jax.block_until_ready(vector_loss(q8, t8, score_ratio))
    ref8 = _reference_loss(q8, t8, score_ratio)
    assert jnp.allclose(loss8, ref8, rtol=1e-3, atol=1e-3), (loss8, ref8)

    # 2) Larger batch exercising the tiled online softmax (grid = (2, 2)).
    k2 = jax.random.PRNGKey(0)
    kq2, kt2 = jax.random.split(k2)
    q2 = jax.random.normal(kq2, (256, 64), dtype=jnp.float32)
    t2 = jax.random.normal(kt2, (256, 64), dtype=jnp.float32)
    q2 = q2 / jnp.linalg.norm(q2, axis=-1, keepdims=True)
    t2 = t2 / jnp.linalg.norm(t2, axis=-1, keepdims=True)
    loss2 = jax.block_until_ready(vector_loss(q2, t2, score_ratio, tq=128, tk=128))
    ref2 = _reference_loss(q2, t2, score_ratio)
    assert jnp.allclose(loss2, ref2, rtol=1e-3, atol=1e-3), (loss2, ref2)

    print("KERNEL_OK")
</pallas_src>

<mosaic_0001>
module attributes {stable_mosaic.version = 11 : i64} {
  func.func @_vector_loss_kernel(%arg0: i32, %arg1: i32, %arg2: memref<8x32xf32, #tpu.memory_space<vmem>>, %arg3: memref<8x32xf32, #tpu.memory_space<vmem>>, %arg4: memref<8x32xf32, #tpu.memory_space<vmem>>, %arg5: memref<8x1xf32, #tpu.memory_space<vmem>>, %arg6: memref<8x1xf32, #tpu.memory_space<vmem>>, %arg7: memref<8x1xf32, #tpu.memory_space<vmem>>) attributes {dimension_semantics = [#tpu.dimension_semantics<parallel>, #tpu.dimension_semantics<arbitrary>], iteration_bounds = array<i64: 1, 1>, scalar_prefetch = 0 : i64, scratch_operands = 2 : i64, tpu.core_type = #tpu.core_type<tc>, window_params = [{transform_indices = @transform_0, window_bounds = array<i64: 8, 32>}, {transform_indices = @transform_1, window_bounds = array<i64: 8, 32>}, {transform_indices = @transform_2, window_bounds = array<i64: 8, 32>}, {transform_indices = @transform_3, window_bounds = array<i64: 8, 1>}]} {
    %c0_i32 = arith.constant 0 : i32
    %0 = arith.cmpi eq, %arg1, %c0_i32 : i32
    %1 = arith.extui %0 : i1 to i32
    %c0_i32_0 = arith.constant 0 : i32
    %2 = arith.cmpi ne, %1, %c0_i32_0 : i32
    scf.if %2 {
      %cst_18 = arith.constant 0xFF800000 : f32
      %27 = vector.broadcast %cst_18 : f32 to vector<8x1xf32>
      %c0_19 = arith.constant 0 : index
      %c0_20 = arith.constant 0 : index
      %28 = vector.load %arg6[%c0_19, %c0_20] : memref<8x1xf32, #tpu.memory_space<vmem>>, vector<8x1xf32>
      tpu.vector_store %arg6[%c0_19, %c0_20], %27 {strides = array<i32>} : memref<8x1xf32, #tpu.memory_space<vmem>>, vector<8x1xf32>,
      %cst_21 = arith.constant 0.000000e+00 : f32
      %29 = vector.broadcast %cst_21 : f32 to vector<8x1xf32>
      %c0_22 = arith.constant 0 : index
      %c0_23 = arith.constant 0 : index
      %30 = vector.load %arg7[%c0_22, %c0_23] : memref<8x1xf32, #tpu.memory_space<vmem>>, vector<8x1xf32>
      tpu.vector_store %arg7[%c0_22, %c0_23], %29 {strides = array<i32>} : memref<8x1xf32, #tpu.memory_space<vmem>>, vector<8x1xf32>,
    } else {
    }
    %c0 = arith.constant 0 : index
    %c0_1 = arith.constant 0 : index
    %3 = vector.load %arg2[%c0, %c0_1] : memref<8x32xf32, #tpu.memory_space<vmem>>, vector<8x32xf32>
    %cst = arith.constant 2.000000e+01 : f32
    %4 = vector.broadcast %cst : f32 to vector<8x32xf32>
    %5 = arith.mulf %3, %4 : vector<8x32xf32>
    %c0_2 = arith.constant 0 : index
    %c0_3 = arith.constant 0 : index
    %6 = vector.load %arg4[%c0_2, %c0_3] : memref<8x32xf32, #tpu.memory_space<vmem>>, vector<8x32xf32>
    %cst_4 = arith.constant dense<0.000000e+00> : vector<8x8xf32>
    %7 = tpu.matmul %5, %6, %cst_4 {dimension_numbers = #tpu.dot_dimension_numbers<[1], [1], [0], [0], [0, 0, 1, 0], [], []>} : vector<8x32xf32>, vector<8x32xf32>, vector<8x8xf32> -> vector<8x8xf32>
    %c0_5 = arith.constant 0 : index
    %c0_6 = arith.constant 0 : index
    %8 = vector.load %arg6[%c0_5, %c0_6] : memref<8x1xf32, #tpu.memory_space<vmem>>, vector<8x1xf32>
    %cst_7 = arith.constant dense<0xFF800000> : vector<8xf32>
    %9 = vector.multi_reduction <maximumf>, %7, %cst_7 [1] : vector<8x8xf32> to vector<8xf32>
    %10 = vector.shape_cast %9 : vector<8xf32> to vector<8x1xf32>
    %11 = arith.maximumf %8, %10 : vector<8x1xf32>
    %12 = arith.subf %8, %11 : vector<8x1xf32>
    %13 = math.exp %12 : vector<8x1xf32>
    %14 = vector.broadcast %11 : vector<8x1xf32> to vector<8x8xf32>
    %15 = arith.subf %7, %14 : vector<8x8xf32>
    %16 = math.exp %15 : vector<8x8xf32>
    %c0_8 = arith.constant 0 : index
    %c0_9 = arith.constant 0 : index
    %17 = vector.load %arg7[%c0_8, %c0_9] : memref<8x1xf32, #tpu.memory_space<vmem>>, vector<8x1xf32>
    %18 = arith.mulf %13, %17 : vector<8x1xf32>
    %cst_10 = arith.constant dense<0.000000e+00> : vector<8xf32>
    %19 = vector.multi_reduction <add>, %16, %cst_10 [1] : vector<8x8xf32> to vector<8xf32>
    %20 = vector.shape_cast %19 : vector<8xf32> to vector<8x1xf32>
    %21 = arith.addf %18, %20 : vector<8x1xf32>
    %c0_11 = arith.constant 0 : index
    %c0_12 = arith.constant 0 : index
    %22 = vector.load %arg7[%c0_11, %c0_12] : memref<8x1xf32, #tpu.memory_space<vmem>>, vector<8x1xf32>
    tpu.vector_store %arg7[%c0_11, %c0_12], %21 {strides = array<i32>} : memref<8x1xf32, #tpu.memory_space<vmem>>, vector<8x1xf32>,
    %c0_13 = arith.constant 0 : index
    %c0_14 = arith.constant 0 : index
    %23 = vector.load %arg6[%c0_13, %c0_14] : memref<8x1xf32, #tpu.memory_space<vmem>>, vector<8x1xf32>
    tpu.vector_store %arg6[%c0_13, %c0_14], %11 {strides = array<i32>} : memref<8x1xf32, #tpu.memory_space<vmem>>, vector<8x1xf32>,
    %c0_i32_15 = arith.constant 0 : i32
    %24 = arith.cmpi eq, %arg1, %c0_i32_15 : i32
    %25 = arith.extui %24 : i1 to i32
    %cst_16 = arith.constant 2.000000e+01 : f32
    %c0_i32_17 = arith.constant 0 : i32
    %26 = arith.cmpi ne, %25, %c0_i32_17 : i32
    scf.if %26 {
      %c0_18 = arith.constant 0 : index
      %c0_19 = arith.constant 0 : index
      %27 = vector.load %arg2[%c0_18, %c0_19] : memref<8x32xf32, #tpu.memory_space<vmem>>, vector<8x32xf32>
      %c0_20 = arith.constant 0 : index
      %c0_21 = arith.constant 0 : index
      %28 = vector.load %arg3[%c0_20, %c0_21] : memref<8x32xf32, #tpu.memory_space<vmem>>, vector<8x32xf32>
      %29 = arith.mulf %27, %28 : vector<8x32xf32>
      %cst_22 = arith.constant dense<0.000000e+00> : vector<8xf32>
      %30 = vector.multi_reduction <add>, %29, %cst_22 [1] : vector<8x32xf32> to vector<8xf32>
      %31 = vector.shape_cast %30 : vector<8xf32> to vector<8x1xf32>
      %32 = vector.broadcast %cst_16 : f32 to vector<8x1xf32>
      %33 = arith.mulf %32, %31 : vector<8x1xf32>
      %c0_23 = arith.constant 0 : index
      %c0_24 = arith.constant 0 : index
      %34 = vector.load %arg6[%c0_23, %c0_24] : memref<8x1xf32, #tpu.memory_space<vmem>>, vector<8x1xf32>
      %c0_25 = arith.constant 0 : index
      %c0_26 = arith.constant 0 : index
      %35 = vector.load %arg7[%c0_25, %c0_26] : memref<8x1xf32, #tpu.memory_space<vmem>>, vector<8x1xf32>
      %36 = math.log %35 : vector<8x1xf32>
      %37 = arith.addf %34, %36 : vector<8x1xf32>
      %38 = arith.subf %37, %33 : vector<8x1xf32>
      %c0_27 = arith.constant 0 : index
      %c0_28 = arith.constant 0 : index
      %39 = vector.load %arg5[%c0_27, %c0_28] : memref<8x1xf32, #tpu.memory_space<vmem>>, vector<8x1xf32>
      tpu.vector_store %arg5[%c0_27, %c0_28], %38 {strides = array<i32>} : memref<8x1xf32, #tpu.memory_space<vmem>>, vector<8x1xf32>,
    } else {
    }
    return
  }
  func.func @transform_0(%arg0: i32, %arg1: i32) -> (i32, i32) {
    %c0_i32 = arith.constant 0 : i32
    %c0_i32_0 = arith.constant 0 : i32
    return %arg0, %c0_i32 : i32, i32
  }
  func.func @transform_1(%arg0: i32, %arg1: i32) -> (i32, i32) {
    %c0_i32 = arith.constant 0 : i32
    %c0_i32_0 = arith.constant 0 : i32
    return %arg0, %c0_i32 : i32, i32
  }
  func.func @transform_2(%arg0: i32, %arg1: i32) -> (i32, i32) {
    %c0_i32 = arith.constant 0 : i32
    %c0_i32_0 = arith.constant 0 : i32
    return %arg1, %c0_i32 : i32, i32
  }
  func.func @transform_3(%arg0: i32, %arg1: i32) -> (i32, i32) {
    %c0_i32 = arith.constant 0 : i32
    %c0_i32_0 = arith.constant 0 : i32
    return %arg0, %c0_i32 : i32, i32
  }
}

</mosaic_0001>

<bundles_post_ra>
// kernel: tpu_custom_call.1
= control target key start
LH: loop header
LB: loop body
LE: loop exit
PB: predicated region body
PF: predicated region fallthrough
CT: control target
= control target key end

     0   :  { %8 = vsyncpa [#allocation5], 0  ;;  %s354_s0 = inlined_call_operand.hbm [shape: f32[8,32], index: 0, kind: input, shape index: {}]   ;;  %s355_s1 = inlined_call_operand.hbm [shape: f32[8,32], index: 1, kind: input, shape index: {}]   ;;  %s356_s2 = inlined_call_operand.hbm [shape: f32[8,32], index: 2, kind: input, shape index: {}]   ;;  %s357_s3 = inlined_call_operand.vmem [shape: f32[8,1], index: 3, kind: output, shape index: {}]  }
   0x1   :  { %9 = vsyncpa [#allocation7], 0  ;;  %s278_s12 = smov [#allocation6]   ;;  %s279_s14 = smov [#allocation4]  }
   0x2   :  { %s26_s13 = sshll.u32 %s278_s12, 4  ;;  %s16_s15 = sshll.u32 %s279_s14, 4  ;;  %s27_s13 = int_to_ptr.vmem [resolvable:$true] %s26_s13  ;;  %s17_s15 = int_to_ptr.vmem [resolvable:$true] %s16_s15 }
   0x3   :  { %s208_s18 = scalar_lea.hbm %s355_s1, 128 }
   0x4   :  { %p209_p0 = scmp.ne.s32.totalorder %s355_s1, %s208_s18  ;;  %p212_p1 = scmp.lt.u32.totalorder %s208_s18, %s355_s1 }
   0x6   :  { %p214_p2 = pnand %p212_p1, %p209_p0 }
   0x8   :  { %217 = shalt.err (!%p214_p2)
}
   0x9   :  { %s218_s23 = scalar_lea.vmem %s27_s13, 128  ;;  %p223_p4 = scmp.lt.s32.totalorder %s27_s13, %s27_s13 }
   0xa   :  { %p219_p3 = scmp.ne.s32.totalorder %s27_s13, %s218_s23  ;;  %p224_p5 = scmp.lt.s32.totalorder %s218_s23, %s218_s23 }
   0xc   :  { %p225_p6 = por %p224_p5, %p223_p4 }
   0xe   :  { %p226_p7 = pnand %p225_p6, %p219_p3 }
  0x10   :  { %229 = shalt.err (!%p226_p7)
}
  0x11   :  { %29 = dma.hbm_to_vmem [thread:$0]  %s355_s1, 128, %s27_s13, [#allocation7]  }
  0x12   :  { %s230_s28 = scalar_lea.hbm %s354_s0, 128 }
  0x13   :  { %p231_p8 = scmp.ne.s32.totalorder %s354_s0, %s230_s28  ;;  %p234_p9 = scmp.lt.u32.totalorder %s230_s28, %s354_s0 }
  0x15   :  { %p236_p10 = pnand %p234_p9, %p231_p8 }
  0x17   :  { %239 = shalt.err (!%p236_p10)
}
  0x18   :  { %s240_s6 = scalar_lea.vmem %s17_s15, 128  ;;  %p245_p12 = scmp.lt.s32.totalorder %s17_s15, %s17_s15 }
  0x19   :  { %p241_p11 = scmp.ne.s32.totalorder %s17_s15, %s240_s6  ;;  %p246_p13 = scmp.lt.s32.totalorder %s240_s6, %s240_s6 }
  0x1b   :  { %p247_p0 = por %p246_p13, %p245_p12 }
  0x1d   :  { %p248_p1 = pnand %p247_p0, %p241_p11 }
  0x1f   :  { %251 = shalt.err (!%p248_p1)
}
  0x20   :  { %19 = dma.hbm_to_vmem [thread:$0]  %s354_s0, 128, %s17_s15, [#allocation5]  }
  0x21   :  { %s280_s8 = smov [#allocation8]   ;;  %s252_s12 = scalar_lea.hbm %s356_s2, 128 }
  0x22   :  { %s36_s9 = sshll.u32 %s280_s8, 4  ;;  %p253_p2 = scmp.ne.s32.totalorder %s356_s2, %s252_s12  ;;  %s37_s9 = int_to_ptr.vmem [resolvable:$true] %s36_s9 }
  0x23   :  { %p256_p3 = scmp.lt.u32.totalorder %s252_s12, %s356_s2 }
  0x25   :  { %p258_p4 = pnand %p256_p3, %p253_p2 }
  0x27   :  { %261 = shalt.err (!%p258_p4)
}
  0x28   :  { %s262_s18 = scalar_lea.vmem %s37_s9, 128  ;;  %p267_p6 = scmp.lt.s32.totalorder %s37_s9, %s37_s9 }
  0x29   :  { %p263_p5 = scmp.ne.s32.totalorder %s37_s9, %s262_s18  ;;  %p268_p7 = scmp.lt.s32.totalorder %s262_s18, %s262_s18 }
  0x2b   :  { %p269_p8 = por %p268_p7, %p267_p6 }
  0x2d   :  { %p270_p9 = pnand %p269_p8, %p263_p5 }
  0x2f   :  { %273 = shalt.err (!%p270_p9)
}
  0x30   :  { %39 = dma.hbm_to_vmem [thread:$0]  %s356_s2, 128, %s37_s9, [#allocation7]  }
  0x31   :  { %274 = dma.done.wait [#allocation5], 128  }
  0x32   :  { %275 = vsyncadd [#allocation5], 4294967168 }
  0x33   :  { %276 = dma.done.wait [#allocation7], 256  }
  0x34   :  { %277 = vsyncadd [#allocation7], 4294967040  ;;  %vm53_vm0 = vcmask 7168   ;;  %v281_v0 = vmov 0.0   ;;  %vm282_vm1 = vmmov 0   ;;  %vm59_vm2 = vcmask 261120  }
  0x35   :  { %55 = vst.msk [vmem:[#allocation3] sm:$0xff] %vm53_vm0, %v281_v0  ;;  %189 = vmatprep.subr.mxu0 %v281_v0  ;;  %191 = vmatprep.mubr.msk.f32.mxu0 %vm282_vm1, %v281_v0  ;;  %v58_v1 = vld [vmem:[#allocation8] sm:$0xff]  ;;  %v56_v2 = vld [vmem:[#allocation4] sm:$0xff]  ;;  %v283_v4 = vmov -inf   ;;  %vm137_vm3 = vcmask 64512   ;;  %v284_v8 = vmov 0  }
  0x36   :  { %190 = vmatpush3.xpose.msk.msra.mxu0 %vm59_vm2, %v58_v1  ;;  %v57_v3 = vmul.f32 20.0, %v56_v2  ;;  %54 = vst.msk [vmem:[#allocation2] sm:$0xff] %vm53_vm0, %v283_v4  ;;  %201 = vset.pattern.permute.xlu0 %v284_v8  ;;  %v166_v16 = vld [vmem:[#allocation6] sm:$0xff] }
  0x37   :  { %v167_v17 = vmul.f32 %v166_v16, %v56_v2 }
  0x39   :  { %192 = vmatmul.mubr.msk.f32.vlgmr.msra.gmra.mrb[0].mxu0 %vm59_vm2, %v57_v3  ;;  %v168_v20 = vsel %vm59_vm2, %v167_v17, 0.0 }
  0x3c   :  { %v153_v23 = vld [vmem:[#allocation3] sm:$0xff] }
  0x3d   :  { %v136_v9 = vld [vmem:[#allocation2] sm:$0xff] }
 0x10c   :  { %v132_v5 = vpop.f32.mrb[0].mxu0 }
 0x10d   :  { %v193_v6 = vpop.f32.mrb[1].mxu0  ;;  %v138_v7 = vsel %vm137_vm3, %v132_v5, -inf }
 0x10e   :  { %139 = vmax.xlane.f32.xlu0 %v138_v7 }
 0x19b   :  { %v140_v10 = vpop.xlane.xlu0 %139 }
 0x19c   :  { %v141_v11 = vmax.f32 %v136_v9, %v140_v10 }
 0x19e   :  { %v142_v12 = vsub.f32 %v136_v9, %v141_v11  ;;  %161 = vst.msk [vmem:[#allocation2] sm:$0xff] %vm53_vm0, %v141_v11  ;;  %147 = vperm.xlu0 %201, %v141_v11  }
 0x1a0   :  { %v143_v21 = vmul.f32 1.442695, %v142_v12 }
 0x1a5   :  { %v172_v32 = vld [vmem:[#allocation2] sm:$0xff] }
 0x21d   :  { %v148_v13 = vpop.permute.xlu0 %147 }
 0x21e   :  { %v150_v14 = vsub.f32 %v132_v5, %v148_v13 }
 0x220   :  { %v151_v15 = vmul.f32 1.442695, %v150_v14 }
 0x222   :  { %202 = vpow2.f32 %v151_v15 }
 0x223   :  { %204 = vpow2.f32 %v143_v21 }
 0x22c   :  { %v203_v18 = vpop.eup %202 }
 0x22d   :  { %v155_v19 = vsel %vm137_vm3, %v203_v18, 0.0  ;;  %v205_v22 = vpop.eup %204 }
 0x22e   :  { %156 = vadd.xlane.f32.xlu1 %v155_v19  ;;  %v154_v24 = vmul.f32 %v205_v22, %v153_v23 }
 0x232   :  { %169 = vadd.xlane.f32.xlu1 %v168_v20 }
 0x2bb   :  { %v157_v25 = vpop.xlane.xlu1 %156 }
 0x2bc   :  { %v158_v26 = vadd.f32 %v157_v25, %v154_v24 }
 0x2be   :  { %160 = vst.msk [vmem:[#allocation3] sm:$0xff] %vm53_vm0, %v158_v26 }
 0x2bf   :  { %v170_v28 = vpop.xlane.xlu1 %169 }
 0x2c0   :  { %v171_v30 = vmul.f32 20.0, %v170_v28 }
 0x2c5   :  { %v173_v27 = vld [vmem:[#allocation3] sm:$0xff] }
 0x2c6   :  { %206 = vlog2.f32 %v173_v27 }
 0x2d0   :  { %v207_v29 = vpop.eup %206 }
 0x2d1   :  { %v175_v31 = vmul.f32 0.6931472, %v207_v29 }
 0x2d3   :  { %v176_v33 = vadd.f32 %v175_v31, %v172_v32 }
 0x2d5   :  { %v177_v34 = vsub.f32 %v176_v33, %v171_v30 }
 0x2d7   :  { %178 = vst.msk [vmem:[%s357_s3] sm:$0xff] %vm53_vm0, %v177_v34 }
 0x2d8   :  { %183 = vsyncpa [#allocation5], 1 }
 0x2d9   :  { %184 = vsyncpa [#allocation7], 1 }

</bundles_post_ra>
